<compile_context>
chip_gen: v7x
topology: tpu7x:2x2x1
jax: 0.10.0
libtpu: 0.0.40
codegen_flags: <defaults>
</compile_context>

<pallas_src>
import jax
import jax.numpy as jnp
from jax.experimental import pallas as pl
from jax.experimental.pallas import tpu as pltpu

IN_DIM = 403
PAD_K = 512                       # feature dim padded to a multiple of 128 lanes
HEAD_PAD = 128                    # fused-head output padded to one full lane register
TASK_DIMS = {"task_a": 8, "task_b": 4}
HEAD_TOTAL = TASK_DIMS["task_a"] + TASK_DIMS["task_b"]
BN_EPS = 1e-5


def _round_up(x, m):
    return (x + m - 1) // m * m


def _fold_bn(gamma, beta, mean, var):
    scale = gamma / jnp.sqrt(var + BN_EPS)
    shift = beta - mean * scale
    return scale, shift


def prepare_params(raw):
    """One-time parameter preparation (NOT per call):
       fold eval-mode BN into W/b, zero-pad to lane-aligned shapes,
       fuse the two task heads into a single matmul, cast weights to bf16."""
    s1, t1 = _fold_bn(*raw["bn1"])
    s2, t2 = _fold_bn(*raw["bn2"])

    def pad_w(w, rows, cols):
        return jnp.zeros((rows, cols), jnp.float32).at[:w.shape[0], :w.shape[1]].set(w)

    def pad_b(b, cols):
        return jnp.zeros((1, cols), jnp.float32).at[:, :b.shape[1]].set(b)

    # BN fold: (x@W + b)*s + t == x@(W*s) + (b*s + t)
    w1 = pad_w(raw["w1_t"] * s1, PAD_K, PAD_K)
    b1 = pad_b(raw["b1"] * s1 + t1, PAD_K)
    w2 = pad_w(raw["w2_t"] * s2, PAD_K, PAD_K)
    b2 = pad_b(raw["b2"] * s2 + t2, PAD_K)

    # Fused heads: columns [0:8) = task_a, [8:12) = task_b, rest zero padding.
    wh = pad_w(jnp.concatenate([raw["wa_t"], raw["wb_t"]], axis=1), PAD_K, HEAD_PAD)
    bh = pad_b(jnp.concatenate([raw["ba"], raw["bb"]], axis=1), HEAD_PAD)

    return {
        "w1": w1.astype(jnp.bfloat16), "b1": b1,
        "w2": w2.astype(jnp.bfloat16), "b2": b2,
        "wh": wh.astype(jnp.bfloat16), "bh": bh,
    }


def _mtl_kernel(x_ref,             # VMEM (TILE_B, 512) f32
                w1_ref, b1_ref,    # VMEM (512, 512) bf16, (1, 512) f32
                w2_ref, b2_ref,    # VMEM (512, 512) bf16, (1, 512) f32
                wh_ref, bh_ref,    # VMEM (512, 128) bf16, (1, 128) f32
                out_ref):          # VMEM (TILE_B, 128) f32
    x = x_ref[...]

    # shared layer 1: Linear (BN folded) -> ReLU   (Dropout == identity in eval)
    h = jnp.dot(x.astype(jnp.bfloat16), w1_ref[...],
                preferred_element_type=jnp.float32) + b1_ref[...]
    h = jnp.maximum(h, 0.0)

    # shared layer 2: Linear (BN folded) -> ReLU
    h = jnp.dot(h.astype(jnp.bfloat16), w2_ref[...],
                preferred_element_type=jnp.float32) + b2_ref[...]
    h = jnp.maximum(h, 0.0)

    # fused task heads (lane-dense output; sliced per task in the wrapper)
    out_ref[...] = jnp.dot(h.astype(jnp.bfloat16), wh_ref[...],
                           preferred_element_type=jnp.float32) + bh_ref[...]


@jax.jit
def multitask_forward(x, prep):
    """x: (B, 1, 403) float32 (PyTorch NCL). Returns dict of (B, 1, task_dim) outputs."""
    B = x.shape[0]
    x2d = x.reshape(B, IN_DIM).astype(jnp.float32)
    x2d = jnp.pad(x2d, ((0, 0), (0, PAD_K - IN_DIM)))          # zero-pad lanes

    tile_b = min(256, _round_up(max(B, 1), 8))                 # sublane-aligned batch tile
    pb = _round_up(B, tile_b)
    if pb != B:
        x2d = jnp.pad(x2d, ((0, pb - B), (0, 0)))

    cost = pl.CostEstimate(
        flops=2 * pb * (2 * PAD_K * PAD_K + PAD_K * HEAD_PAD),
        transcendentals=0,
        bytes_accessed=(2 * PAD_K * PAD_K + PAD_K * HEAD_PAD) * 2     # bf16 weights
                       + (2 * PAD_K + HEAD_PAD) * 4                    # f32 biases
                       + pb * PAD_K * 4 + pb * HEAD_PAD * 4,           # x + out
    )

    out = pl.pallas_call(
        _mtl_kernel,
        out_shape=jax.ShapeDtypeStruct((pb, HEAD_PAD), jnp.float32),
        grid=(pb // tile_b,),
        in_specs=[
            pl.BlockSpec((tile_b, PAD_K), lambda i: (i, 0)),       # x tile
            pl.BlockSpec((PAD_K, PAD_K), lambda i: (0, 0)),        # w1 (VMEM-resident)
            pl.BlockSpec((1, PAD_K), lambda i: (0, 0)),            # b1
            pl.BlockSpec((PAD_K, PAD_K), lambda i: (0, 0)),        # w2
            pl.BlockSpec((1, PAD_K), lambda i: (0, 0)),            # b2
            pl.BlockSpec((PAD_K, HEAD_PAD), lambda i: (0, 0)),     # fused head W
            pl.BlockSpec((1, HEAD_PAD), lambda i: (0, 0)),         # fused head b
        ],
        out_specs=pl.BlockSpec((tile_b, HEAD_PAD), lambda i: (i, 0)),
        compiler_params=pltpu.CompilerParams(
            dimension_semantics=("parallel",)),
        cost_estimate=cost,
    )(x2d, prep["w1"], prep["b1"], prep["w2"], prep["b2"], prep["wh"], prep["bh"])

    a = out[:B, :TASK_DIMS["task_a"]].reshape(B, 1, TASK_DIMS["task_a"])
    b = out[:B, TASK_DIMS["task_a"]:HEAD_TOTAL].reshape(B, 1, TASK_DIMS["task_b"])
    return {"task_a": a, "task_b": b}


# ----------------------------- references ----------------------------------

def _reference_prepared(x, prep):
    """Plain-JAX mirror of the exact kernel math (bf16 weights, f32 accumulation)."""
    B = x.shape[0]
    h = jnp.pad(x.reshape(B, IN_DIM), ((0, 0), (0, PAD_K - IN_DIM)))
    h = jnp.maximum(jnp.dot(h.astype(jnp.bfloat16), prep["w1"],
                            preferred_element_type=jnp.float32) + prep["b1"], 0.0)
    h = jnp.maximum(jnp.dot(h.astype(jnp.bfloat16), prep["w2"],
                            preferred_element_type=jnp.float32) + prep["b2"], 0.0)
    o = jnp.dot(h.astype(jnp.bfloat16), prep["wh"],
                preferred_element_type=jnp.float32) + prep["bh"]
    return {"task_a": o[:, :TASK_DIMS["task_a"]].reshape(B, 1, -1),
            "task_b": o[:, TASK_DIMS["task_a"]:HEAD_TOTAL].reshape(B, 1, -1)}


def _reference_f32(x, raw):
    """Full-precision plain-JAX reference of the eval-mode PyTorch forward."""
    B = x.shape[0]
    s1, t1 = _fold_bn(*raw["bn1"])
    s2, t2 = _fold_bn(*raw["bn2"])
    h = x.reshape(B, IN_DIM)
    h = jnp.maximum((h @ raw["w1_t"] + raw["b1"]) * s1 + t1, 0.0)
    h = jnp.maximum((h @ raw["w2_t"] + raw["b2"]) * s2 + t2, 0.0)
    return {"task_a": (h @ raw["wa_t"] + raw["ba"]).reshape(B, 1, -1),
            "task_b": (h @ raw["wb_t"] + raw["bb"]).reshape(B, 1, -1)}


def _init_params(key):
    ks = jax.random.split(key, 8)
    scale = 1.0 / jnp.sqrt(jnp.float32(IN_DIM))
    return {
        # PyTorch Linear stores (out, in); we keep the transposed (in, out) form.
        "w1_t": jax.random.uniform(ks[0], (IN_DIM, IN_DIM), jnp.float32, -scale, scale),
        "b1":   jax.random.uniform(ks[1], (1, IN_DIM), jnp.float32, -scale, scale),
        "w2_t": jax.random.uniform(ks[2], (IN_DIM, IN_DIM), jnp.float32, -scale, scale),
        "b2":   jax.random.uniform(ks[3], (1, IN_DIM), jnp.float32, -scale, scale),
        "wa_t": jax.random.uniform(ks[4], (IN_DIM, TASK_DIMS["task_a"]),
                                   jnp.float32, -scale, scale),
        "ba":   jax.random.uniform(ks[5], (1, TASK_DIMS["task_a"]),
                                   jnp.float32, -scale, scale),
        "wb_t": jax.random.uniform(ks[6], (IN_DIM, TASK_DIMS["task_b"]),
                                   jnp.float32, -scale, scale),
        "bb":   jax.random.uniform(ks[7], (1, TASK_DIMS["task_b"]),
                                   jnp.float32, -scale, scale),
        # BatchNorm1d(num_features=1): (gamma, beta, running_mean, running_var) scalars.
        "bn1": (jnp.float32(1.2), jnp.float32(0.1), jnp.float32(0.05), jnp.float32(0.9)),
        "bn2": (jnp.float32(0.8), jnp.float32(-0.2), jnp.float32(-0.03), jnp.float32(1.1)),
    }


if __name__ == "__main__":
    key = jax.random.PRNGKey(0)
    k_x, k_p = jax.random.split(key)

    B = 2
    x = jax.random.normal(k_x, (B, 1, IN_DIM), jnp.float32)   # (B, 1, 403) NCL
    raw = _init_params(k_p)
    prep = prepare_params(raw)                                 # one-time param prep

    out = multitask_forward(x, prep)
    jax.block_until_ready(out)

    ref_bf16 = _reference_prepared(x, prep)    # same math as the kernel
    ref_f32 = _reference_f32(x, raw)           # full-precision module semantics
    for name in out:
        assert out[name].shape == (B, 1, TASK_DIMS[name]), name
        assert jnp.allclose(out[name], ref_bf16[name], atol=2e-3, rtol=2e-3), name
        assert jnp.allclose(out[name], ref_f32[name], atol=1e-1, rtol=1e-1), name

    print("KERNEL_OK")
</pallas_src>

<mosaic_0001>
module attributes {stable_mosaic.version = 11 : i64} {
  func.func @_mtl_kernel(%arg0: i32, %arg1: memref<8x512xf32, #tpu.memory_space<vmem>>, %arg2: memref<512x512xbf16, #tpu.memory_space<vmem>>, %arg3: memref<1x512xf32, #tpu.memory_space<vmem>>, %arg4: memref<512x512xbf16, #tpu.memory_space<vmem>>, %arg5: memref<1x512xf32, #tpu.memory_space<vmem>>, %arg6: memref<512x128xbf16, #tpu.memory_space<vmem>>, %arg7: memref<1x128xf32, #tpu.memory_space<vmem>>, %arg8: memref<8x128xf32, #tpu.memory_space<vmem>>) attributes {dimension_semantics = [#tpu.dimension_semantics<parallel>], iteration_bounds = array<i64: 1>, scalar_prefetch = 0 : i64, scratch_operands = 0 : i64, tpu.core_type = #tpu.core_type<tc>, window_params = [{transform_indices = @transform_0, window_bounds = array<i64: 8, 512>}, {pipeline_mode = #tpu.pipeline_mode<synchronous>, transform_indices = @transform_1, window_bounds = array<i64: 512, 512>}, {pipeline_mode = #tpu.pipeline_mode<synchronous>, transform_indices = @transform_2, window_bounds = array<i64: 1, 512>}, {pipeline_mode = #tpu.pipeline_mode<synchronous>, transform_indices = @transform_3, window_bounds = array<i64: 512, 512>}, {pipeline_mode = #tpu.pipeline_mode<synchronous>, transform_indices = @transform_4, window_bounds = array<i64: 1, 512>}, {pipeline_mode = #tpu.pipeline_mode<synchronous>, transform_indices = @transform_5, window_bounds = array<i64: 512, 128>}, {pipeline_mode = #tpu.pipeline_mode<synchronous>, transform_indices = @transform_6, window_bounds = array<i64: 1, 128>}, {transform_indices = @transform_7, window_bounds = array<i64: 8, 128>}]} {
    %c0 = arith.constant 0 : index
    %c0_0 = arith.constant 0 : index
    %0 = vector.load %arg1[%c0, %c0_0] : memref<8x512xf32, #tpu.memory_space<vmem>>, vector<8x512xf32>
    %1 = arith.truncf %0 : vector<8x512xf32> to vector<8x512xbf16>
    %c0_1 = arith.constant 0 : index
    %c0_2 = arith.constant 0 : index
    %2 = vector.load %arg2[%c0_1, %c0_2] : memref<512x512xbf16, #tpu.memory_space<vmem>>, vector<512x512xbf16>
    %cst = arith.constant dense<0.000000e+00> : vector<8x512xf32>
    %3 = tpu.matmul %1, %2, %cst {dimension_numbers = #tpu.dot_dimension_numbers<[1], [0], [0], [1], [0, 0, 1, 1], [], []>} : vector<8x512xbf16>, vector<512x512xbf16>, vector<8x512xf32> -> vector<8x512xf32>
    %c0_3 = arith.constant 0 : index
    %c0_4 = arith.constant 0 : index
    %4 = vector.load %arg3[%c0_3, %c0_4] : memref<1x512xf32, #tpu.memory_space<vmem>>, vector<1x512xf32>
    %5 = vector.broadcast %4 : vector<1x512xf32> to vector<8x512xf32>
    %6 = arith.addf %3, %5 : vector<8x512xf32>
    %cst_5 = arith.constant 0.000000e+00 : f32
    %7 = vector.broadcast %cst_5 : f32 to vector<8x512xf32>
    %8 = arith.maximumf %6, %7 : vector<8x512xf32>
    %9 = arith.truncf %8 : vector<8x512xf32> to vector<8x512xbf16>
    %c0_6 = arith.constant 0 : index
    %c0_7 = arith.constant 0 : index
    %10 = vector.load %arg4[%c0_6, %c0_7] : memref<512x512xbf16, #tpu.memory_space<vmem>>, vector<512x512xbf16>
    %cst_8 = arith.constant dense<0.000000e+00> : vector<8x512xf32>
    %11 = tpu.matmul %9, %10, %cst_8 {dimension_numbers = #tpu.dot_dimension_numbers<[1], [0], [0], [1], [0, 0, 1, 1], [], []>} : vector<8x512xbf16>, vector<512x512xbf16>, vector<8x512xf32> -> vector<8x512xf32>
    %c0_9 = arith.constant 0 : index
    %c0_10 = arith.constant 0 : index
    %12 = vector.load %arg5[%c0_9, %c0_10] : memref<1x512xf32, #tpu.memory_space<vmem>>, vector<1x512xf32>
    %13 = vector.broadcast %12 : vector<1x512xf32> to vector<8x512xf32>
    %14 = arith.addf %11, %13 : vector<8x512xf32>
    %cst_11 = arith.constant 0.000000e+00 : f32
    %15 = vector.broadcast %cst_11 : f32 to vector<8x512xf32>
    %16 = arith.maximumf %14, %15 : vector<8x512xf32>
    %17 = arith.truncf %16 : vector<8x512xf32> to vector<8x512xbf16>
    %c0_12 = arith.constant 0 : index
    %c0_13 = arith.constant 0 : index
    %18 = vector.load %arg6[%c0_12, %c0_13] : memref<512x128xbf16, #tpu.memory_space<vmem>>, vector<512x128xbf16>
    %cst_14 = arith.constant dense<0.000000e+00> : vector<8x128xf32>
    %19 = tpu.matmul %17, %18, %cst_14 {dimension_numbers = #tpu.dot_dimension_numbers<[1], [0], [0], [1], [0, 0, 1, 1], [], []>} : vector<8x512xbf16>, vector<512x128xbf16>, vector<8x128xf32> -> vector<8x128xf32>
    %c0_15 = arith.constant 0 : index
    %c0_16 = arith.constant 0 : index
    %20 = vector.load %arg7[%c0_15, %c0_16] : memref<1x128xf32, #tpu.memory_space<vmem>>, vector<1x128xf32>
    %21 = vector.broadcast %20 : vector<1x128xf32> to vector<8x128xf32>
    %22 = arith.addf %19, %21 : vector<8x128xf32>
    %c0_17 = arith.constant 0 : index
    %c0_18 = arith.constant 0 : index
    %23 = vector.load %arg8[%c0_17, %c0_18] : memref<8x128xf32, #tpu.memory_space<vmem>>, vector<8x128xf32>
    tpu.vector_store %arg8[%c0_17, %c0_18], %22 {strides = array<i32>} : memref<8x128xf32, #tpu.memory_space<vmem>>, vector<8x128xf32>,
    return
  }
  func.func @transform_0(%arg0: i32) -> (i32, i32) {
    %c0_i32 = arith.constant 0 : i32
    %c0_i32_0 = arith.constant 0 : i32
    return %arg0, %c0_i32 : i32, i32
  }
  func.func @transform_1(%arg0: i32) -> (i32, i32) {
    %c0_i32 = arith.constant 0 : i32
    %c0_i32_0 = arith.constant 0 : i32
    %c0_i32_1 = arith.constant 0 : i32
    return %c0_i32, %c0_i32_0 : i32, i32
  }
  func.func @transform_2(%arg0: i32) -> (i32, i32) {
    %c0_i32 = arith.constant 0 : i32
    %c0_i32_0 = arith.constant 0 : i32
    %c0_i32_1 = arith.constant 0 : i32
    return %c0_i32, %c0_i32_0 : i32, i32
  }
  func.func @transform_3(%arg0: i32) -> (i32, i32) {
    %c0_i32 = arith.constant 0 : i32
    %c0_i32_0 = arith.constant 0 : i32
    %c0_i32_1 = arith.constant 0 : i32
    return %c0_i32, %c0_i32_0 : i32, i32
  }
  func.func @transform_4(%arg0: i32) -> (i32, i32) {
    %c0_i32 = arith.constant 0 : i32
    %c0_i32_0 = arith.constant 0 : i32
    %c0_i32_1 = arith.constant 0 : i32
    return %c0_i32, %c0_i32_0 : i32, i32
  }
  func.func @transform_5(%arg0: i32) -> (i32, i32) {
    %c0_i32 = arith.constant 0 : i32
    %c0_i32_0 = arith.constant 0 : i32
    %c0_i32_1 = arith.constant 0 : i32
    return %c0_i32, %c0_i32_0 : i32, i32
  }
  func.func @transform_6(%arg0: i32) -> (i32, i32) {
    %c0_i32 = arith.constant 0 : i32
    %c0_i32_0 = arith.constant 0 : i32
    %c0_i32_1 = arith.constant 0 : i32
    return %c0_i32, %c0_i32_0 : i32, i32
  }
  func.func @transform_7(%arg0: i32) -> (i32, i32) {
    %c0_i32 = arith.constant 0 : i32
    %c0_i32_0 = arith.constant 0 : i32
    return %arg0, %c0_i32 : i32, i32
  }
}

</mosaic_0001>

<bundles_post_ra>
// kernel: multitask_forward.1
= control target key start
LH: loop header
LB: loop body
LE: loop exit
PB: predicated region body
PF: predicated region fallthrough
CT: control target
= control target key end

     0   :  { %12 = vsyncpa [#allocation3], 0  ;;  %s3345_s0 = inlined_call_operand.vmem [shape: f32[8,512], index: 0, kind: input, shape index: {}]   ;;  %s3346_s1 = inlined_call_operand.hbm [shape: bf16[512,512], index: 1, kind: input, shape index: {}]   ;;  %s3347_s2 = inlined_call_operand.vmem [shape: f32[1,512], index: 2, kind: input, shape index: {}]   ;;  %s3348_s3 = inlined_call_operand.hbm [shape: bf16[512,512], index: 3, kind: input, shape index: {}]   ;;  %s3349_s4 = inlined_call_operand.vmem [shape: f32[1,512], index: 4, kind: input, shape index: {}]   ;;  %s3350_s5 = inlined_call_operand.hbm [shape: bf16[512,128], index: 5, kind: input, shape index: {}]   ;;  %s3351_s6 = inlined_call_operand.vmem [shape: f32[1,128], index: 6, kind: input, shape index: {}]   ;;  %s3352_s7 = inlined_call_operand.vmem [shape: f32[8,128], index: 7, kind: output, shape index: {}]  }
   0x1   :  { %13 = vsyncpa [#allocation5], 0  ;;  %s3200_s24 = smov [#allocation4]   ;;  %s3201_s26 = smov [#allocation2]  }
   0x2   :  { %s35_s25 = sshll.u32 %s3200_s24, 4  ;;  %s21_s27 = sshll.u32 %s3201_s26, 4  ;;  %s36_s25 = int_to_ptr.vmem [resolvable:$true] %s35_s25  ;;  %s3247_s27 = int_to_ptr.vmem [resolvable:$true] %s21_s27 }
   0x3   :  { %s3130_s30 = scalar_lea.hbm %s3348_s3, 16384 }
   0x4   :  { %p3131_p0 = scmp.ne.s32.totalorder %s3348_s3, %s3130_s30  ;;  %p3134_p1 = scmp.lt.u32.totalorder %s3130_s30, %s3348_s3 }
   0x6   :  { %p3136_p2 = pnand %p3134_p1, %p3131_p0 }
   0x8   :  { %3139 = shalt.err (!%p3136_p2)
}
   0x9   :  { %s3140_s12 = scalar_lea.vmem %s36_s25, 16384  ;;  %p3145_p4 = scmp.lt.s32.totalorder %s36_s25, %s36_s25 }
   0xa   :  { %p3141_p3 = scmp.ne.s32.totalorder %s36_s25, %s3140_s12  ;;  %p3146_p5 = scmp.lt.s32.totalorder %s3140_s12, %s3140_s12 }
   0xc   :  { %p3147_p6 = por %p3146_p5, %p3145_p4 }
   0xe   :  { %p3148_p7 = pnand %p3147_p6, %p3141_p3 }
  0x10   :  { %3151 = shalt.err (!%p3148_p7)
}
  0x11   :  { %s3202_s13 = smov 256   ;;  %s3203_s14 = smov 16  }
  0x12   :  { %41 = dma.hbm_to_vmem [thread:$0]  %s3348_s3, 16384, %s36_s25, [#allocation5], %s3202_s13, %s3202_s13, %s3203_s14  }
  0x13   :  { %s3152_s19 = scalar_lea.hbm %s3346_s1, 16384 }
  0x14   :  { %p3153_p8 = scmp.ne.s32.totalorder %s3346_s1, %s3152_s19  ;;  %p3156_p9 = scmp.lt.u32.totalorder %s3152_s19, %s3346_s1 }
  0x16   :  { %p3158_p10 = pnand %p3156_p9, %p3153_p8 }
  0x18   :  { %3161 = shalt.err (!%p3158_p10)
}
  0x19   :  { %s3162_s24 = scalar_lea.vmem %s3247_s27, 16384  ;;  %p3167_p12 = scmp.lt.s32.totalorder %s3247_s27, %s3247_s27 }
  0x1a   :  { %p3163_p11 = scmp.ne.s32.totalorder %s3247_s27, %s3162_s24  ;;  %p3168_p13 = scmp.lt.s32.totalorder %s3162_s24, %s3162_s24 }
  0x1c   :  { %p3169_p0 = por %p3168_p13, %p3167_p12 }
  0x1e   :  { %p3170_p1 = pnand %p3169_p0, %p3163_p11 }
  0x20   :  { %3173 = shalt.err (!%p3170_p1)
}
  0x21   :  { %27 = dma.hbm_to_vmem [thread:$0]  %s3346_s1, 16384, %s3247_s27, [#allocation3], %s3202_s13, %s3202_s13, %s3203_s14  }
  0x22   :  { %s3204_s26 = smov [#allocation6]   ;;  %s3174_s8 = scalar_lea.hbm %s3350_s5, 4096 }
  0x23   :  { %s49_s28 = sshll.u32 %s3204_s26, 4  ;;  %p3175_p2 = scmp.ne.s32.totalorder %s3350_s5, %s3174_s8  ;;  %s50_s28 = int_to_ptr.vmem [resolvable:$true] %s49_s28 }
  0x24   :  { %p3178_p3 = scmp.lt.u32.totalorder %s3174_s8, %s3350_s5 }
  0x26   :  { %p3180_p4 = pnand %p3178_p3, %p3175_p2 }
  0x28   :  { %3183 = shalt.err (!%p3180_p4)
}
  0x29   :  { %s3184_s15 = scalar_lea.vmem %s50_s28, 4096  ;;  %p3189_p6 = scmp.lt.s32.totalorder %s50_s28, %s50_s28 }
  0x2a   :  { %p3185_p5 = scmp.ne.s32.totalorder %s50_s28, %s3184_s15  ;;  %p3190_p7 = scmp.lt.s32.totalorder %s3184_s15, %s3184_s15 }
  0x2c   :  { %p3191_p8 = por %p3190_p7, %p3189_p6 }
  0x2e   :  { %p3192_p9 = pnand %p3191_p8, %p3185_p5 }
  0x30   :  { %3195 = shalt.err (!%p3192_p9)
}
  0x31   :  { %s3205_s1 = smov 64   ;;  %s3206_s27 = smov 4  }
  0x32   :  { %55 = dma.hbm_to_vmem [thread:$0]  %s3350_s5, 4096, %s50_s28, [#allocation5], %s3205_s1, %s3205_s1, %s3206_s27  }
  0x33   :  { %3196 = dma.done.wait [#allocation3], 16384  }
  0x34   :  { %3197 = vsyncadd [#allocation3], 4294950912 }
  0x35   :  { %3198 = dma.done.wait [#allocation5], 20480  }
  0x36   :  { %3199 = vsyncadd [#allocation5], 4294946816  ;;  %v2714_v0 = vld [vmem:[#allocation2 + $0x4] ss:$16 sps:$4 sm:$0xff]   ;;  %v2716_v1 = vld [vmem:[#allocation2 + $0xc] ss:$16 sps:$4 sm:$0xff]  }
  0x37   :  { %866 = vmatprep.subr.bf16.mxu0 %v2714_v0  ;;  %v2718_v2 = vld [vmem:[#allocation2] ss:$16 sps:$4 sm:$0xff]   ;;  %v2719_v3 = vld [vmem:[#allocation2 + $0x8] ss:$16 sps:$4 sm:$0xff]   ;;  %948 = vmatprep.subr.bf16.mxu1 %v2716_v1  ;;  %v2720_v4 = vld [vmem:[#allocation2 + $0x24] ss:$16 sps:$4 sm:$0xff]  }
  0x38   :  { %867 = vmatpush1.bf16.msra.mxu0 %v2718_v2  ;;  %949 = vmatpush1.bf16.msra.mxu1 %v2719_v3  ;;  %v2722_v5 = vld [vmem:[#allocation2 + $0x2c] ss:$16 sps:$4 sm:$0xff]   ;;  %v2724_v6 = vld [vmem:[#allocation2 + $0x20] ss:$16 sps:$4 sm:$0xff]   ;;  %v2725_v7 = vld [vmem:[#allocation2 + $0x28] ss:$16 sps:$4 sm:$0xff]  }
  0x39   :  { %868 = vmatprep.subr.bf16.mxu0 %v2720_v4  ;;  %950 = vmatprep.subr.bf16.mxu1 %v2722_v5  ;;  %v2726_v8 = vld [vmem:[#allocation2 + $0x44] ss:$16 sps:$4 sm:$0xff]   ;;  %v2728_v9 = vld [vmem:[#allocation2 + $0x4c] ss:$16 sps:$4 sm:$0xff]   ;;  %v2730_v10 = vld [vmem:[#allocation2 + $0x40] ss:$16 sps:$4 sm:$0xff]  }
  0x3a   :  { %v2731_v11 = vld [vmem:[#allocation2 + $0x48] ss:$16 sps:$4 sm:$0xff]   ;;  %v2732_v12 = vld [vmem:[#allocation2 + $0x64] ss:$16 sps:$4 sm:$0xff]   ;;  %v2734_v13 = vld [vmem:[#allocation2 + $0x6c] ss:$16 sps:$4 sm:$0xff]  }
  0x3b   :  { %v2736_v14 = vld [vmem:[#allocation2 + $0x60] ss:$16 sps:$4 sm:$0xff]   ;;  %v2737_v15 = vld [vmem:[#allocation2 + $0x68] ss:$16 sps:$4 sm:$0xff]   ;;  %v2738_v16 = vld [vmem:[#allocation2 + $0x84] ss:$16 sps:$4 sm:$0xff]  }
  0x3c   :  { %869 = vmatpush1.bf16.msra.mxu0 %v2724_v6  ;;  %951 = vmatpush1.bf16.msra.mxu1 %v2725_v7  ;;  %v2740_v17 = vld [vmem:[#allocation2 + $0x8c] ss:$16 sps:$4 sm:$0xff]   ;;  %v2742_v18 = vld [vmem:[#allocation2 + $0x80] ss:$16 sps:$4 sm:$0xff]   ;;  %v2743_v19 = vld [vmem:[#allocation2 + $0x88] ss:$16 sps:$4 sm:$0xff]  }
  0x3d   :  { %870 = vmatprep.subr.bf16.mxu0 %v2726_v8  ;;  %952 = vmatprep.subr.bf16.mxu1 %v2728_v9  ;;  %v2744_v20 = vld [vmem:[#allocation2 + $0xa4] ss:$16 sps:$4 sm:$0xff]   ;;  %v2746_v21 = vld [vmem:[#allocation2 + $0xac] ss:$16 sps:$4 sm:$0xff]   ;;  %v2748_v22 = vld [vmem:[#allocation2 + $0xa0] ss:$16 sps:$4 sm:$0xff]  }
  0x3e   :  { %v2749_v23 = vld [vmem:[#allocation2 + $0xa8] ss:$16 sps:$4 sm:$0xff]   ;;  %v2750_v24 = vld [vmem:[#allocation2 + $0xc4] ss:$16 sps:$4 sm:$0xff]   ;;  %v2752_v25 = vld [vmem:[#allocation2 + $0xcc] ss:$16 sps:$4 sm:$0xff]  }
  0x3f   :  { %v2754_v26 = vld [vmem:[#allocation2 + $0xc0] ss:$16 sps:$4 sm:$0xff]   ;;  %v2755_v27 = vld [vmem:[#allocation2 + $0xc8] ss:$16 sps:$4 sm:$0xff]   ;;  %v2756_v28 = vld [vmem:[#allocation2 + $0xe4] ss:$16 sps:$4 sm:$0xff]  }
  0x40   :  { %871 = vmatpush1.bf16.msra.mxu0 %v2730_v10  ;;  %953 = vmatpush1.bf16.msra.mxu1 %v2731_v11  ;;  %v2758_v29 = vld [vmem:[#allocation2 + $0xec] ss:$16 sps:$4 sm:$0xff]   ;;  %v2760_v30 = vld [vmem:[#allocation2 + $0xe0] ss:$16 sps:$4 sm:$0xff]   ;;  %v2761_v31 = vld [vmem:[#allocation2 + $0xe8] ss:$16 sps:$4 sm:$0xff]  }
  0x41   :  { %872 = vmatprep.subr.bf16.mxu0 %v2732_v12  ;;  %954 = vmatprep.subr.bf16.mxu1 %v2734_v13  ;;  %v2762_v32 = vld [vmem:[#allocation2 + $0x104] ss:$16 sps:$4 sm:$0xff]   ;;  %v2764_v33 = vld [vmem:[#allocation2 + $0x10c] ss:$16 sps:$4 sm:$0xff]   ;;  %v2766_v34 = vld [vmem:[#allocation2 + $0x100] ss:$16 sps:$4 sm:$0xff]  }
  0x42   :  { %v2767_v35 = vld [vmem:[#allocation2 + $0x108] ss:$16 sps:$4 sm:$0xff]   ;;  %v2768_v36 = vld [vmem:[#allocation2 + $0x124] ss:$16 sps:$4 sm:$0xff]   ;;  %v2770_v37 = vld [vmem:[#allocation2 + $0x12c] ss:$16 sps:$4 sm:$0xff]  }
  0x43   :  { %v2772_v38 = vld [vmem:[#allocation2 + $0x120] ss:$16 sps:$4 sm:$0xff]   ;;  %v2773_v39 = vld [vmem:[#allocation2 + $0x128] ss:$16 sps:$4 sm:$0xff]   ;;  %v2774_v40 = vld [vmem:[#allocation2 + $0x144] ss:$16 sps:$4 sm:$0xff]  }
  0x44   :  { %873 = vmatpush1.bf16.msra.mxu0 %v2736_v14  ;;  %955 = vmatpush1.bf16.msra.mxu1 %v2737_v15  ;;  %v2776_v41 = vld [vmem:[#allocation2 + $0x14c] ss:$16 sps:$4 sm:$0xff]   ;;  %v2778_v42 = vld [vmem:[#allocation2 + $0x140] ss:$16 sps:$4 sm:$0xff]   ;;  %v2779_v43 = vld [vmem:[#allocation2 + $0x148] ss:$16 sps:$4 sm:$0xff]  }
  0x45   :  { %874 = vmatprep.subr.bf16.mxu0 %v2738_v16  ;;  %956 = vmatprep.subr.bf16.mxu1 %v2740_v17  ;;  %v2780_v44 = vld [vmem:[#allocation2 + $0x164] ss:$16 sps:$4 sm:$0xff]   ;;  %v2782_v45 = vld [vmem:[#allocation2 + $0x16c] ss:$16 sps:$4 sm:$0xff]   ;;  %v2784_v47 = vld [vmem:[#allocation2 + $0x160] ss:$16 sps:$4 sm:$0xff]  }
  0x46   :  { %v69_v46 = vld [vmem:[%s3345_s0 + $0x8] sm:$0xff]  ;;  %v2786_v50 = vld [vmem:[#allocation2 + $0x184] ss:$16 sps:$4 sm:$0xff]   ;;  %v2790_v52 = vld [vmem:[#allocation2 + $0x180] ss:$16 sps:$4 sm:$0xff]  }
  0x47   :  { %v73_v48 = vpack.c.bf16 %v69_v46, %v69_v46  ;;  %v2785_v49 = vld [vmem:[#allocation2 + $0x168] ss:$16 sps:$4 sm:$0xff]   ;;  %v2788_v51 = vld [vmem:[#allocation2 + $0x18c] ss:$16 sps:$4 sm:$0xff]   ;;  %v2792_v54 = vld [vmem:[#allocation2 + $0x1a4] ss:$16 sps:$4 sm:$0xff]  }
  0x48   :  { %875 = vmatpush1.bf16.msra.mxu0 %v2742_v18  ;;  %957 = vmatpush1.bf16.msra.mxu1 %v2743_v19  ;;  %v2791_v53 = vld [vmem:[#allocation2 + $0x188] ss:$16 sps:$4 sm:$0xff]   ;;  %v2794_v55 = vld [vmem:[#allocation2 + $0x1ac] ss:$16 sps:$4 sm:$0xff]   ;;  %v2796_v56 = vld [vmem:[#allocation2 + $0x1a0] ss:$16 sps:$4 sm:$0xff]  }
  0x49   :  { %876 = vmatprep.subr.bf16.mxu0 %v2744_v20  ;;  %958 = vmatprep.subr.bf16.mxu1 %v2746_v21  ;;  %v2797_v57 = vld [vmem:[#allocation2 + $0x1a8] ss:$16 sps:$4 sm:$0xff]   ;;  %v2798_v58 = vld [vmem:[#allocation2 + $0x1c4] ss:$16 sps:$4 sm:$0xff]   ;;  %v2800_v59 = vld [vmem:[#allocation2 + $0x1cc] ss:$16 sps:$4 sm:$0xff]  }
  0x4a   :  { %898 = vmatprep.mubr.bf16.mxu0 %v73_v48  ;;  %980 = vmatprep.mubr.bf16.mxu1 %v73_v48  ;;  %v2802_v60 = vld [vmem:[#allocation2 + $0x1c0] ss:$16 sps:$4 sm:$0xff]   ;;  %v2803_v61 = vld [vmem:[#allocation2 + $0x1c8] ss:$16 sps:$4 sm:$0xff]   ;;  %v2804_v62 = vld [vmem:[#allocation2 + $0x1e4] ss:$16 sps:$4 sm:$0xff]  }
  0x4b   :  { %v2806_v63 = vld [vmem:[#allocation2 + $0x1ec] ss:$16 sps:$4 sm:$0xff]   ;;  %v2808_v0 = vld [vmem:[#allocation2 + $0x1e0] ss:$16 sps:$4 sm:$0xff]   ;;  %v2809_v1 = vld [vmem:[#allocation2 + $0x1e8] ss:$16 sps:$4 sm:$0xff]  }
  0x4c   :  { %877 = vmatpush1.bf16.msra.mxu0 %v2748_v22  ;;  %959 = vmatpush1.bf16.msra.mxu1 %v2749_v23  ;;  %v68_v2 = vld [vmem:[%s3345_s0] sm:$0xff]  ;;  %v2815_v4 = vld [vmem:[#allocation2 + $0x20c] ss:$16 sps:$4 sm:$0xff]   ;;  %v2813_v7 = vld [vmem:[#allocation2 + $0x208] ss:$16 sps:$4 sm:$0xff]  }
  0x4d   :  { %878 = vmatprep.subr.bf16.mxu0 %v2750_v24  ;;  %960 = vmatprep.subr.bf16.mxu1 %v2752_v25  ;;  %v2812_v3 = vld [vmem:[#allocation2 + $0x204] ss:$16 sps:$4 sm:$0xff]   ;;  %v72_v5 = vpack.c.bf16 %v68_v2, %v68_v2  ;;  %v2810_v6 = vld [vmem:[#allocation2 + $0x200] ss:$16 sps:$4 sm:$0xff]   ;;  %v2821_v9 = vld [vmem:[#allocation2 + $0x22c] ss:$16 sps:$4 sm:$0xff]  }
  0x4e   :  { %v2818_v8 = vld [vmem:[#allocation2 + $0x224] ss:$16 sps:$4 sm:$0xff]   ;;  %v2816_v10 = vld [vmem:[#allocation2 + $0x220] ss:$16 sps:$4 sm:$0xff]   ;;  %v2819_v11 = vld [vmem:[#allocation2 + $0x228] ss:$16 sps:$4 sm:$0xff]  }
  0x4f   :  { %v2824_v12 = vld [vmem:[#allocation2 + $0x244] ss:$16 sps:$4 sm:$0xff]   ;;  %v2827_v13 = vld [vmem:[#allocation2 + $0x24c] ss:$16 sps:$4 sm:$0xff]   ;;  %v2822_v14 = vld [vmem:[#allocation2 + $0x240] ss:$16 sps:$4 sm:$0xff]  }
  0x50   :  { %879 = vmatpush1.bf16.msra.mxu0 %v2754_v26  ;;  %961 = vmatpush1.bf16.msra.mxu1 %v2755_v27  ;;  %v2825_v15 = vld [vmem:[#allocation2 + $0x248] ss:$16 sps:$4 sm:$0xff]   ;;  %v2830_v16 = vld [vmem:[#allocation2 + $0x264] ss:$16 sps:$4 sm:$0xff]   ;;  %v2833_v17 = vld [vmem:[#allocation2 + $0x26c] ss:$16 sps:$4 sm:$0xff]  }
  0x51   :  { %880 = vmatprep.subr.bf16.mxu0 %v2756_v28  ;;  %962 = vmatprep.subr.bf16.mxu1 %v2758_v29  ;;  %v2828_v18 = vld [vmem:[#allocation2 + $0x260] ss:$16 sps:$4 sm:$0xff]   ;;  %v2831_v19 = vld [vmem:[#allocation2 + $0x268] ss:$16 sps:$4 sm:$0xff]   ;;  %v2836_v20 = vld [vmem:[#allocation2 + $0x284] ss:$16 sps:$4 sm:$0xff]  }
  0x52   :  { %v2839_v21 = vld [vmem:[#allocation2 + $0x28c] ss:$16 sps:$4 sm:$0xff]   ;;  %v2834_v22 = vld [vmem:[#allocation2 + $0x280] ss:$16 sps:$4 sm:$0xff]   ;;  %v2837_v23 = vld [vmem:[#allocation2 + $0x288] ss:$16 sps:$4 sm:$0xff]  }
  0x53   :  { %v2842_v24 = vld [vmem:[#allocation2 + $0x2a4] ss:$16 sps:$4 sm:$0xff]   ;;  %v2845_v25 = vld [vmem:[#allocation2 + $0x2ac] ss:$16 sps:$4 sm:$0xff]   ;;  %v2840_v26 = vld [vmem:[#allocation2 + $0x2a0] ss:$16 sps:$4 sm:$0xff]  }
  0x54   :  { %881 = vmatpush1.bf16.msra.mxu0 %v2760_v30  ;;  %963 = vmatpush1.bf16.msra.mxu1 %v2761_v31  ;;  %v2843_v27 = vld [vmem:[#allocation2 + $0x2a8] ss:$16 sps:$4 sm:$0xff]   ;;  %v2848_v28 = vld [vmem:[#allocation2 + $0x2c4] ss:$16 sps:$4 sm:$0xff]   ;;  %v2851_v29 = vld [vmem:[#allocation2 + $0x2cc] ss:$16 sps:$4 sm:$0xff]  }
  0x55   :  { %882 = vmatprep.subr.bf16.mxu0 %v2762_v32  ;;  %964 = vmatprep.subr.bf16.mxu1 %v2764_v33  ;;  %v71_v30 = vld [vmem:[%s3345_s0 + $0x18] sm:$0xff]  ;;  %v2846_v31 = vld [vmem:[#allocation2 + $0x2c0] ss:$16 sps:$4 sm:$0xff]   ;;  %v2872_v46 = vld [vmem:[#allocation2 + $0x344] ss:$16 sps:$4 sm:$0xff]  }
  0x56   :  { %v2849_v32 = vld [vmem:[#allocation2 + $0x2c8] ss:$16 sps:$4 sm:$0xff]   ;;  %v75_v33 = vpack.c.bf16 %v71_v30, %v71_v30  ;;  %v2870_v48 = vld [vmem:[#allocation2 + $0x340] ss:$16 sps:$4 sm:$0xff]   ;;  %v2902_v2 = vld [vmem:[#allocation2 + $0x3e4] ss:$16 sps:$4 sm:$0xff]  }
  0x57   :  { %v2936_v30 = vld [vmem:[#allocation4 + $0xa0] ss:$16 sps:$4 sm:$0xff]  }
  0x58   :  { %883 = vmatpush1.bf16.msra.mxu0 %v2766_v34  ;;  %965 = vmatpush1.bf16.msra.mxu1 %v2767_v35  ;;  %v2854_v34 = vld [vmem:[#allocation2 + $0x2e4] ss:$16 sps:$4 sm:$0xff]   ;;  %v2857_v35 = vld [vmem:[#allocation2 + $0x2ec] ss:$16 sps:$4 sm:$0xff]  }
  0x59   :  { %884 = vmatprep.subr.bf16.mxu0 %v2768_v36  ;;  %966 = vmatprep.subr.bf16.mxu1 %v2770_v37  ;;  %v2852_v36 = vld [vmem:[#allocation2 + $0x2e0] ss:$16 sps:$4 sm:$0xff]   ;;  %v2855_v37 = vld [vmem:[#allocation2 + $0x2e8] ss:$16 sps:$4 sm:$0xff]  }
  0x5c   :  { %885 = vmatpush1.bf16.msra.mxu0 %v2772_v38  ;;  %967 = vmatpush1.bf16.msra.mxu1 %v2773_v39  ;;  %v2860_v38 = vld [vmem:[#allocation2 + $0x304] ss:$16 sps:$4 sm:$0xff]   ;;  %v2863_v39 = vld [vmem:[#allocation2 + $0x30c] ss:$16 sps:$4 sm:$0xff]  }
  0x5d   :  { %886 = vmatprep.subr.bf16.mxu0 %v2774_v40  ;;  %968 = vmatprep.subr.bf16.mxu1 %v2776_v41  ;;  %v2858_v40 = vld [vmem:[#allocation2 + $0x300] ss:$16 sps:$4 sm:$0xff]   ;;  %v2861_v41 = vld [vmem:[#allocation2 + $0x308] ss:$16 sps:$4 sm:$0xff]  }
  0x60   :  { %887 = vmatpush1.bf16.msra.mxu0 %v2778_v42  ;;  %969 = vmatpush1.bf16.msra.mxu1 %v2779_v43  ;;  %v2866_v42 = vld [vmem:[#allocation2 + $0x324] ss:$16 sps:$4 sm:$0xff]   ;;  %v2869_v43 = vld [vmem:[#allocation2 + $0x32c] ss:$16 sps:$4 sm:$0xff]  }
  0x61   :  { %888 = vmatprep.subr.bf16.mxu0 %v2780_v44  ;;  %970 = vmatprep.subr.bf16.mxu1 %v2782_v45  ;;  %v2864_v44 = vld [vmem:[#allocation2 + $0x320] ss:$16 sps:$4 sm:$0xff]   ;;  %v2867_v45 = vld [vmem:[#allocation2 + $0x328] ss:$16 sps:$4 sm:$0xff]  }
  0x64   :  { %889 = vmatpush1.bf16.msra.mxu0 %v2784_v47  ;;  %971 = vmatpush1.bf16.msra.mxu1 %v2785_v49  ;;  %v2875_v47 = vld [vmem:[#allocation2 + $0x34c] ss:$16 sps:$4 sm:$0xff]   ;;  %v2873_v49 = vld [vmem:[#allocation2 + $0x348] ss:$16 sps:$4 sm:$0xff]  }
  0x65   :  { %890 = vmatprep.subr.bf16.mxu0 %v2786_v50  ;;  %972 = vmatprep.subr.bf16.mxu1 %v2788_v51  ;;  %v2878_v50 = vld [vmem:[#allocation2 + $0x364] ss:$16 sps:$4 sm:$0xff]   ;;  %v2881_v51 = vld [vmem:[#allocation2 + $0x36c] ss:$16 sps:$4 sm:$0xff]  }
  0x68   :  { %891 = vmatpush1.bf16.msra.mxu0 %v2790_v52  ;;  %973 = vmatpush1.bf16.msra.mxu1 %v2791_v53  ;;  %v2876_v52 = vld [vmem:[#allocation2 + $0x360] ss:$16 sps:$4 sm:$0xff]   ;;  %v2879_v53 = vld [vmem:[#allocation2 + $0x368] ss:$16 sps:$4 sm:$0xff]  }
  0x69   :  { %892 = vmatprep.subr.bf16.mxu0 %v2792_v54  ;;  %974 = vmatprep.subr.bf16.mxu1 %v2794_v55  ;;  %v2884_v54 = vld [vmem:[#allocation2 + $0x384] ss:$16 sps:$4 sm:$0xff]   ;;  %v2887_v55 = vld [vmem:[#allocation2 + $0x38c] ss:$16 sps:$4 sm:$0xff]  }
  0x6c   :  { %893 = vmatpush1.bf16.msra.mxu0 %v2796_v56  ;;  %975 = vmatpush1.bf16.msra.mxu1 %v2797_v57  ;;  %v2882_v56 = vld [vmem:[#allocation2 + $0x380] ss:$16 sps:$4 sm:$0xff]   ;;  %v2885_v57 = vld [vmem:[#allocation2 + $0x388] ss:$16 sps:$4 sm:$0xff]  }
  0x6d   :  { %894 = vmatprep.subr.bf16.mxu0 %v2798_v58  ;;  %976 = vmatprep.subr.bf16.mxu1 %v2800_v59  ;;  %v2890_v58 = vld [vmem:[#allocation2 + $0x3a4] ss:$16 sps:$4 sm:$0xff]   ;;  %v2893_v59 = vld [vmem:[#allocation2 + $0x3ac] ss:$16 sps:$4 sm:$0xff]  }
  0x70   :  { %895 = vmatpush1.bf16.msra.mxu0 %v2802_v60  ;;  %977 = vmatpush1.bf16.msra.mxu1 %v2803_v61  ;;  %v2888_v60 = vld [vmem:[#allocation2 + $0x3a0] ss:$16 sps:$4 sm:$0xff]   ;;  %v2891_v61 = vld [vmem:[#allocation2 + $0x3a8] ss:$16 sps:$4 sm:$0xff]  }
  0x71   :  { %896 = vmatprep.subr.bf16.mxu0 %v2804_v62  ;;  %978 = vmatprep.subr.bf16.mxu1 %v2806_v63  ;;  %v2896_v62 = vld [vmem:[#allocation2 + $0x3c4] ss:$16 sps:$4 sm:$0xff]   ;;  %v2899_v63 = vld [vmem:[#allocation2 + $0x3cc] ss:$16 sps:$4 sm:$0xff]  }
  0x74   :  { %897 = vmatpush1.bf16.msra.mxu0 %v2808_v0  ;;  %979 = vmatpush1.bf16.msra.mxu1 %v2809_v1  ;;  %v2894_v0 = vld [vmem:[#allocation2 + $0x3c0] ss:$16 sps:$4 sm:$0xff]   ;;  %v2897_v1 = vld [vmem:[#allocation2 + $0x3c8] ss:$16 sps:$4 sm:$0xff]  }
  0x75   :  { %907 = vmatprep.subr.bf16.mxu0 %v2812_v3  ;;  %989 = vmatprep.subr.bf16.mxu1 %v2815_v4  ;;  %v2905_v3 = vld [vmem:[#allocation2 + $0x3ec] ss:$16 sps:$4 sm:$0xff]   ;;  %v2900_v4 = vld [vmem:[#allocation2 + $0x3e0] ss:$16 sps:$4 sm:$0xff]  }
  0x77   :  { %899 = vmatmul.mubr.bf16.vlgmr.msra.gmra.mrb[0].mxu0 %v72_v5  ;;  %981 = vmatmul.mubr.bf16.vlgmr.msra.gmra.mrb[0].mxu1 %v72_v5  ;;  %v2903_v5 = vld [vmem:[#allocation2 + $0x3e8] ss:$16 sps:$4 sm:$0xff]  }
  0x78   :  { %908 = vmatpush1.bf16.msra.mxu0 %v2810_v6  ;;  %990 = vmatpush1.bf16.msra.mxu1 %v2813_v7  ;;  %v70_v6 = vld [vmem:[%s3345_s0 + $0x10] sm:$0xff] }
  0x79   :  { %909 = vmatprep.subr.bf16.mxu0 %v2818_v8  ;;  %991 = vmatprep.subr.bf16.mxu1 %v2821_v9  ;;  %v2908_v7 = vld [vmem:[#allocation4 + $0x4] ss:$16 sps:$4 sm:$0xff]   ;;  %v2911_v8 = vld [vmem:[#allocation4 + $0xc] ss:$16 sps:$4 sm:$0xff]   ;;  %v2906_v9 = vld [vmem:[#allocation4] ss:$16 sps:$4 sm:$0xff]  }
  0x7a   :  { %939 = vmatprep.mubr.bf16.mxu0 %v75_v33  ;;  %1021 = vmatprep.mubr.bf16.mxu1 %v75_v33  ;;  %v2947_v33 = vld [vmem:[#allocation4 + $0xcc] ss:$16 sps:$4 sm:$0xff]  }
  0x7c   :  { %910 = vmatpush1.bf16.msra.mxu0 %v2816_v10  ;;  %992 = vmatpush1.bf16.msra.mxu1 %v2819_v11  ;;  %v2909_v10 = vld [vmem:[#allocation4 + $0x8] ss:$16 sps:$4 sm:$0xff]   ;;  %v74_v11 = vpack.c.bf16 %v70_v6, %v70_v6  ;;  %v2996_v6 = vld [vmem:[#allocation4 + $0x1e0] ss:$16 sps:$4 sm:$0xff]  }
  0x7d   :  { %911 = vmatprep.subr.bf16.mxu0 %v2824_v12  ;;  %993 = vmatprep.subr.bf16.mxu1 %v2827_v13  ;;  %v2914_v12 = vld [vmem:[#allocation4 + $0x24] ss:$16 sps:$4 sm:$0xff]   ;;  %v2917_v13 = vld [vmem:[#allocation4 + $0x2c] ss:$16 sps:$4 sm:$0xff]  }
  0x80   :  { %912 = vmatpush1.bf16.msra.mxu0 %v2822_v14  ;;  %994 = vmatpush1.bf16.msra.mxu1 %v2825_v15  ;;  %v2912_v14 = vld [vmem:[#allocation4 + $0x20] ss:$16 sps:$4 sm:$0xff]   ;;  %v2915_v15 = vld [vmem:[#allocation4 + $0x28] ss:$16 sps:$4 sm:$0xff]  }
  0x81   :  { %913 = vmatprep.subr.bf16.mxu0 %v2830_v16  ;;  %995 = vmatprep.subr.bf16.mxu1 %v2833_v17  ;;  %v2920_v16 = vld [vmem:[#allocation4 + $0x44] ss:$16 sps:$4 sm:$0xff]   ;;  %v2923_v17 = vld [vmem:[#allocation4 + $0x4c] ss:$16 sps:$4 sm:$0xff]  }
  0x84   :  { %914 = vmatpush1.bf16.msra.mxu0 %v2828_v18  ;;  %996 = vmatpush1.bf16.msra.mxu1 %v2831_v19  ;;  %v2918_v18 = vld [vmem:[#allocation4 + $0x40] ss:$16 sps:$4 sm:$0xff]   ;;  %v2921_v19 = vld [vmem:[#allocation4 + $0x48] ss:$16 sps:$4 sm:$0xff]  }
  0x85   :  { %915 = vmatprep.subr.bf16.mxu0 %v2836_v20  ;;  %997 = vmatprep.subr.bf16.mxu1 %v2839_v21  ;;  %v2926_v20 = vld [vmem:[#allocation4 + $0x64] ss:$16 sps:$4 sm:$0xff]   ;;  %v2929_v21 = vld [vmem:[#allocation4 + $0x6c] ss:$16 sps:$4 sm:$0xff]  }
  0x88   :  { %916 = vmatpush1.bf16.msra.mxu0 %v2834_v22  ;;  %998 = vmatpush1.bf16.msra.mxu1 %v2837_v23  ;;  %v2924_v22 = vld [vmem:[#allocation4 + $0x60] ss:$16 sps:$4 sm:$0xff]   ;;  %v2927_v23 = vld [vmem:[#allocation4 + $0x68] ss:$16 sps:$4 sm:$0xff]  }
  0x89   :  { %917 = vmatprep.subr.bf16.mxu0 %v2842_v24  ;;  %999 = vmatprep.subr.bf16.mxu1 %v2845_v25  ;;  %v2932_v24 = vld [vmem:[#allocation4 + $0x84] ss:$16 sps:$4 sm:$0xff]   ;;  %v2935_v25 = vld [vmem:[#allocation4 + $0x8c] ss:$16 sps:$4 sm:$0xff]  }
  0x8c   :  { %918 = vmatpush1.bf16.msra.mxu0 %v2840_v26  ;;  %1000 = vmatpush1.bf16.msra.mxu1 %v2843_v27  ;;  %v2930_v26 = vld [vmem:[#allocation4 + $0x80] ss:$16 sps:$4 sm:$0xff]   ;;  %v2933_v27 = vld [vmem:[#allocation4 + $0x88] ss:$16 sps:$4 sm:$0xff]  }
  0x8d   :  { %919 = vmatprep.subr.bf16.mxu0 %v2848_v28  ;;  %1001 = vmatprep.subr.bf16.mxu1 %v2851_v29  ;;  %v2938_v28 = vld [vmem:[#allocation4 + $0xa4] ss:$16 sps:$4 sm:$0xff]   ;;  %v2941_v29 = vld [vmem:[#allocation4 + $0xac] ss:$16 sps:$4 sm:$0xff]  }
  0x90   :  { %920 = vmatpush1.bf16.msra.mxu0 %v2846_v31  ;;  %1002 = vmatpush1.bf16.msra.mxu1 %v2849_v32  ;;  %v2939_v31 = vld [vmem:[#allocation4 + $0xa8] ss:$16 sps:$4 sm:$0xff]   ;;  %v2944_v32 = vld [vmem:[#allocation4 + $0xc4] ss:$16 sps:$4 sm:$0xff]  }
  0x91   :  { %921 = vmatprep.subr.bf16.mxu0 %v2854_v34  ;;  %1003 = vmatprep.subr.bf16.mxu1 %v2857_v35  ;;  %v2942_v34 = vld [vmem:[#allocation4 + $0xc0] ss:$16 sps:$4 sm:$0xff]   ;;  %v2945_v35 = vld [vmem:[#allocation4 + $0xc8] ss:$16 sps:$4 sm:$0xff]  }
  0x94   :  { %922 = vmatpush1.bf16.msra.mxu0 %v2852_v36  ;;  %1004 = vmatpush1.bf16.msra.mxu1 %v2855_v37  ;;  %v2950_v36 = vld [vmem:[#allocation4 + $0xe4] ss:$16 sps:$4 sm:$0xff]   ;;  %v2953_v37 = vld [vmem:[#allocation4 + $0xec] ss:$16 sps:$4 sm:$0xff]  }
  0x95   :  { %923 = vmatprep.subr.bf16.mxu0 %v2860_v38  ;;  %1005 = vmatprep.subr.bf16.mxu1 %v2863_v39  ;;  %v2948_v38 = vld [vmem:[#allocation4 + $0xe0] ss:$16 sps:$4 sm:$0xff]   ;;  %v2951_v39 = vld [vmem:[#allocation4 + $0xe8] ss:$16 sps:$4 sm:$0xff]  }
  0x98   :  { %924 = vmatpush1.bf16.msra.mxu0 %v2858_v40  ;;  %1006 = vmatpush1.bf16.msra.mxu1 %v2861_v41  ;;  %v2956_v40 = vld [vmem:[#allocation4 + $0x104] ss:$16 sps:$4 sm:$0xff]   ;;  %v2959_v41 = vld [vmem:[#allocation4 + $0x10c] ss:$16 sps:$4 sm:$0xff]  }
  0x99   :  { %925 = vmatprep.subr.bf16.mxu0 %v2866_v42  ;;  %1007 = vmatprep.subr.bf16.mxu1 %v2869_v43  ;;  %v2954_v42 = vld [vmem:[#allocation4 + $0x100] ss:$16 sps:$4 sm:$0xff]   ;;  %v2957_v43 = vld [vmem:[#allocation4 + $0x108] ss:$16 sps:$4 sm:$0xff]  }
  0x9c   :  { %926 = vmatpush1.bf16.msra.mxu0 %v2864_v44  ;;  %1008 = vmatpush1.bf16.msra.mxu1 %v2867_v45  ;;  %v2962_v44 = vld [vmem:[#allocation4 + $0x124] ss:$16 sps:$4 sm:$0xff]   ;;  %v2965_v45 = vld [vmem:[#allocation4 + $0x12c] ss:$16 sps:$4 sm:$0xff]  }
  0x9d   :  { %927 = vmatprep.subr.bf16.mxu0 %v2872_v46  ;;  %1009 = vmatprep.subr.bf16.mxu1 %v2875_v47  ;;  %v2960_v46 = vld [vmem:[#allocation4 + $0x120] ss:$16 sps:$4 sm:$0xff]   ;;  %v2963_v47 = vld [vmem:[#allocation4 + $0x128] ss:$16 sps:$4 sm:$0xff]  }
  0xa0   :  { %928 = vmatpush1.bf16.msra.mxu0 %v2870_v48  ;;  %1010 = vmatpush1.bf16.msra.mxu1 %v2873_v49  ;;  %v2968_v48 = vld [vmem:[#allocation4 + $0x144] ss:$16 sps:$4 sm:$0xff]   ;;  %v2971_v49 = vld [vmem:[#allocation4 + $0x14c] ss:$16 sps:$4 sm:$0xff]  }
  0xa1   :  { %929 = vmatprep.subr.bf16.mxu0 %v2878_v50  ;;  %1011 = vmatprep.subr.bf16.mxu1 %v2881_v51  ;;  %v2966_v50 = vld [vmem:[#allocation4 + $0x140] ss:$16 sps:$4 sm:$0xff]   ;;  %v2969_v51 = vld [vmem:[#allocation4 + $0x148] ss:$16 sps:$4 sm:$0xff]  }
  0xa4   :  { %930 = vmatpush1.bf16.msra.mxu0 %v2876_v52  ;;  %1012 = vmatpush1.bf16.msra.mxu1 %v2879_v53  ;;  %v2974_v52 = vld [vmem:[#allocation4 + $0x164] ss:$16 sps:$4 sm:$0xff]   ;;  %v2977_v53 = vld [vmem:[#allocation4 + $0x16c] ss:$16 sps:$4 sm:$0xff]  }
  0xa5   :  { %931 = vmatprep.subr.bf16.mxu0 %v2884_v54  ;;  %1013 = vmatprep.subr.bf16.mxu1 %v2887_v55  ;;  %v2972_v54 = vld [vmem:[#allocation4 + $0x160] ss:$16 sps:$4 sm:$0xff]   ;;  %v2975_v55 = vld [vmem:[#allocation4 + $0x168] ss:$16 sps:$4 sm:$0xff]  }
  0xa8   :  { %932 = vmatpush1.bf16.msra.mxu0 %v2882_v56  ;;  %1014 = vmatpush1.bf16.msra.mxu1 %v2885_v57  ;;  %v2980_v56 = vld [vmem:[#allocation4 + $0x184] ss:$16 sps:$4 sm:$0xff]   ;;  %v2983_v57 = vld [vmem:[#allocation4 + $0x18c] ss:$16 sps:$4 sm:$0xff]  }
  0xa9   :  { %933 = vmatprep.subr.bf16.mxu0 %v2890_v58  ;;  %1015 = vmatprep.subr.bf16.mxu1 %v2893_v59  ;;  %v2978_v58 = vld [vmem:[#allocation4 + $0x180] ss:$16 sps:$4 sm:$0xff]   ;;  %v2981_v59 = vld [vmem:[#allocation4 + $0x188] ss:$16 sps:$4 sm:$0xff]  }
  0xac   :  { %934 = vmatpush1.bf16.msra.mxu0 %v2888_v60  ;;  %1016 = vmatpush1.bf16.msra.mxu1 %v2891_v61  ;;  %v2986_v60 = vld [vmem:[#allocation4 + $0x1a4] ss:$16 sps:$4 sm:$0xff]   ;;  %v2989_v61 = vld [vmem:[#allocation4 + $0x1ac] ss:$16 sps:$4 sm:$0xff]  }
  0xad   :  { %935 = vmatprep.subr.bf16.mxu0 %v2896_v62  ;;  %1017 = vmatprep.subr.bf16.mxu1 %v2899_v63  ;;  %v2984_v62 = vld [vmem:[#allocation4 + $0x1a0] ss:$16 sps:$4 sm:$0xff]   ;;  %v2987_v63 = vld [vmem:[#allocation4 + $0x1a8] ss:$16 sps:$4 sm:$0xff]  }
  0xb0   :  { %936 = vmatpush1.bf16.msra.mxu0 %v2894_v0  ;;  %1018 = vmatpush1.bf16.msra.mxu1 %v2897_v1  ;;  %v2992_v0 = vld [vmem:[#allocation4 + $0x1c4] ss:$16 sps:$4 sm:$0xff]   ;;  %v2995_v1 = vld [vmem:[#allocation4 + $0x1cc] ss:$16 sps:$4 sm:$0xff]  }
  0xb1   :  { %937 = vmatprep.subr.bf16.mxu0 %v2902_v2  ;;  %1019 = vmatprep.subr.bf16.mxu1 %v2905_v3  ;;  %v2990_v2 = vld [vmem:[#allocation4 + $0x1c0] ss:$16 sps:$4 sm:$0xff]   ;;  %v2993_v3 = vld [vmem:[#allocation4 + $0x1c8] ss:$16 sps:$4 sm:$0xff]  }
  0xb4   :  { %938 = vmatpush1.bf16.msra.mxu0 %v2900_v4  ;;  %1020 = vmatpush1.bf16.msra.mxu1 %v2903_v5  ;;  %v2998_v4 = vld [vmem:[#allocation4 + $0x1e4] ss:$16 sps:$4 sm:$0xff]   ;;  %v3001_v5 = vld [vmem:[#allocation4 + $0x1ec] ss:$16 sps:$4 sm:$0xff]  }
  0xb5   :  { %1828 = vmatprep.subr.bf16.mxu0 %v2908_v7  ;;  %1910 = vmatprep.subr.bf16.mxu1 %v2911_v8  ;;  %v2999_v7 = vld [vmem:[#allocation4 + $0x1e8] ss:$16 sps:$4 sm:$0xff]   ;;  %v3004_v8 = vld [vmem:[#allocation4 + $0x204] ss:$16 sps:$4 sm:$0xff]  }
  0xb7   :  { %940 = vmatmul.mubr.bf16.vlgmr.msra.gmra.mrb[0].mxu0 %v74_v11  ;;  %1022 = vmatmul.mubr.bf16.vlgmr.msra.gmra.mrb[0].mxu1 %v74_v11 }
  0xb8   :  { %1829 = vmatpush1.bf16.msra.mxu0 %v2906_v9  ;;  %1911 = vmatpush1.bf16.msra.mxu1 %v2909_v10  ;;  %v3007_v9 = vld [vmem:[#allocation4 + $0x20c] ss:$16 sps:$4 sm:$0xff]   ;;  %v206_v10 = vlaneseq }
  0xb9   :  { %1830 = vmatprep.subr.bf16.mxu0 %v2914_v12  ;;  %1912 = vmatprep.subr.bf16.mxu1 %v2917_v13  ;;  %v3308_v13 = vld [vmem:[%s3347_s2] sm:$0xf] }
  0xba   :  { %v3302_v11 = vshrl.u32 %v206_v10, 7  ;;  %v3064_v10 = vld [vmem:[#allocation4 + $0x344] ss:$16 sps:$4 sm:$0xff]  }
  0xbc   :  { %1831 = vmatpush1.bf16.msra.mxu0 %v2912_v14  ;;  %1913 = vmatpush1.bf16.msra.mxu1 %v2915_v15  ;;  %v208_v12 = vsub.s32 0, %v3302_v11  ;;  %v212_v14 = vsub.s32 1, %v3302_v11  ;;  %v220_v15 = vsub.s32 3, %v3302_v11 }
  0xbd   :  { %1832 = vmatprep.subr.bf16.mxu0 %v2920_v16  ;;  %1914 = vmatprep.subr.bf16.mxu1 %v2923_v17 }
  0xbe   :  { %v209_v16 = vrot.slane %v3308_v13, %v208_v12  ;;  %v213_v17 = vrot.slane %v3308_v13, %v212_v14 }
  0xc0   :  { %1833 = vmatpush1.bf16.msra.mxu0 %v2918_v18  ;;  %1915 = vmatpush1.bf16.msra.mxu1 %v2921_v19  ;;  %v221_v18 = vrot.slane %v3308_v13, %v220_v15 }
  0xc1   :  { %1834 = vmatprep.subr.bf16.mxu0 %v2926_v20  ;;  %1916 = vmatprep.subr.bf16.mxu1 %v2929_v21 }
  0xc4   :  { %1835 = vmatpush1.bf16.msra.mxu0 %v2924_v22  ;;  %1917 = vmatpush1.bf16.msra.mxu1 %v2927_v23 }
  0xc5   :  { %1836 = vmatprep.subr.bf16.mxu0 %v2932_v24  ;;  %1918 = vmatprep.subr.bf16.mxu1 %v2935_v25 }
  0xc8   :  { %1837 = vmatpush1.bf16.msra.mxu0 %v2930_v26  ;;  %1919 = vmatpush1.bf16.msra.mxu1 %v2933_v27 }
  0xc9   :  { %1838 = vmatprep.subr.bf16.mxu0 %v2938_v28  ;;  %1920 = vmatprep.subr.bf16.mxu1 %v2941_v29 }
  0xcc   :  { %1839 = vmatpush1.bf16.msra.mxu0 %v2936_v30  ;;  %1921 = vmatpush1.bf16.msra.mxu1 %v2939_v31 }
  0xcd   :  { %1840 = vmatprep.subr.bf16.mxu0 %v2944_v32  ;;  %1922 = vmatprep.subr.bf16.mxu1 %v2947_v33 }
  0xd0   :  { %1841 = vmatpush1.bf16.msra.mxu0 %v2942_v34  ;;  %1923 = vmatpush1.bf16.msra.mxu1 %v2945_v35  ;;  %v3002_v34 = vld [vmem:[#allocation4 + $0x200] ss:$16 sps:$4 sm:$0xff]   ;;  %v3005_v35 = vld [vmem:[#allocation4 + $0x208] ss:$16 sps:$4 sm:$0xff]  }
  0xd1   :  { %1842 = vmatprep.subr.bf16.mxu0 %v2950_v36  ;;  %1924 = vmatprep.subr.bf16.mxu1 %v2953_v37  ;;  %v3010_v37 = vld [vmem:[#allocation4 + $0x224] ss:$16 sps:$4 sm:$0xff]  }
  0xd4   :  { %1843 = vmatpush1.bf16.msra.mxu0 %v2948_v38  ;;  %1925 = vmatpush1.bf16.msra.mxu1 %v2951_v39  ;;  %v3013_v38 = vld [vmem:[#allocation4 + $0x22c] ss:$16 sps:$4 sm:$0xff]  }
  0xd5   :  { %1844 = vmatprep.subr.bf16.mxu0 %v2956_v40  ;;  %1926 = vmatprep.subr.bf16.mxu1 %v2959_v41  ;;  %v3008_v40 = vld [vmem:[#allocation4 + $0x220] ss:$16 sps:$4 sm:$0xff]   ;;  %v3011_v41 = vld [vmem:[#allocation4 + $0x228] ss:$16 sps:$4 sm:$0xff]  }
  0xd8   :  { %1845 = vmatpush1.bf16.msra.mxu0 %v2954_v42  ;;  %1927 = vmatpush1.bf16.msra.mxu1 %v2957_v43  ;;  %v3016_v42 = vld [vmem:[#allocation4 + $0x244] ss:$16 sps:$4 sm:$0xff]   ;;  %v3019_v43 = vld [vmem:[#allocation4 + $0x24c] ss:$16 sps:$4 sm:$0xff]  }
  0xd9   :  { %1846 = vmatprep.subr.bf16.mxu0 %v2962_v44  ;;  %1928 = vmatprep.subr.bf16.mxu1 %v2965_v45  ;;  %v3014_v44 = vld [vmem:[#allocation4 + $0x240] ss:$16 sps:$4 sm:$0xff]   ;;  %v3017_v45 = vld [vmem:[#allocation4 + $0x248] ss:$16 sps:$4 sm:$0xff]  }
  0xdc   :  { %1847 = vmatpush1.bf16.msra.mxu0 %v2960_v46  ;;  %1929 = vmatpush1.bf16.msra.mxu1 %v2963_v47  ;;  %v3022_v46 = vld [vmem:[#allocation4 + $0x264] ss:$16 sps:$4 sm:$0xff]   ;;  %v3025_v47 = vld [vmem:[#allocation4 + $0x26c] ss:$16 sps:$4 sm:$0xff]  }
  0xdd   :  { %1848 = vmatprep.subr.bf16.mxu0 %v2968_v48  ;;  %1930 = vmatprep.subr.bf16.mxu1 %v2971_v49  ;;  %v3020_v48 = vld [vmem:[#allocation4 + $0x260] ss:$16 sps:$4 sm:$0xff]   ;;  %v3023_v49 = vld [vmem:[#allocation4 + $0x268] ss:$16 sps:$4 sm:$0xff]  }
  0xe0   :  { %1849 = vmatpush1.bf16.msra.mxu0 %v2966_v50  ;;  %1931 = vmatpush1.bf16.msra.mxu1 %v2969_v51  ;;  %v3028_v50 = vld [vmem:[#allocation4 + $0x284] ss:$16 sps:$4 sm:$0xff]   ;;  %v3031_v51 = vld [vmem:[#allocation4 + $0x28c] ss:$16 sps:$4 sm:$0xff]  }
  0xe1   :  { %1850 = vmatprep.subr.bf16.mxu0 %v2974_v52  ;;  %1932 = vmatprep.subr.bf16.mxu1 %v2977_v53  ;;  %v3026_v52 = vld [vmem:[#allocation4 + $0x280] ss:$16 sps:$4 sm:$0xff]   ;;  %v3029_v53 = vld [vmem:[#allocation4 + $0x288] ss:$16 sps:$4 sm:$0xff]  }
  0xe4   :  { %1851 = vmatpush1.bf16.msra.mxu0 %v2972_v54  ;;  %1933 = vmatpush1.bf16.msra.mxu1 %v2975_v55  ;;  %v3034_v54 = vld [vmem:[#allocation4 + $0x2a4] ss:$16 sps:$4 sm:$0xff]   ;;  %v3037_v55 = vld [vmem:[#allocation4 + $0x2ac] ss:$16 sps:$4 sm:$0xff]  }
  0xe5   :  { %1852 = vmatprep.subr.bf16.mxu0 %v2980_v56  ;;  %1934 = vmatprep.subr.bf16.mxu1 %v2983_v57  ;;  %v3032_v56 = vld [vmem:[#allocation4 + $0x2a0] ss:$16 sps:$4 sm:$0xff]   ;;  %v3035_v57 = vld [vmem:[#allocation4 + $0x2a8] ss:$16 sps:$4 sm:$0xff]  }
  0xe8   :  { %1853 = vmatpush1.bf16.msra.mxu0 %v2978_v58  ;;  %1935 = vmatpush1.bf16.msra.mxu1 %v2981_v59  ;;  %v3040_v58 = vld [vmem:[#allocation4 + $0x2c4] ss:$16 sps:$4 sm:$0xff]   ;;  %v3043_v59 = vld [vmem:[#allocation4 + $0x2cc] ss:$16 sps:$4 sm:$0xff]  }
  0xe9   :  { %1854 = vmatprep.subr.bf16.mxu0 %v2986_v60  ;;  %1936 = vmatprep.subr.bf16.mxu1 %v2989_v61  ;;  %v3038_v60 = vld [vmem:[#allocation4 + $0x2c0] ss:$16 sps:$4 sm:$0xff]   ;;  %v3041_v61 = vld [vmem:[#allocation4 + $0x2c8] ss:$16 sps:$4 sm:$0xff]  }
  0xec   :  { %1855 = vmatpush1.bf16.msra.mxu0 %v2984_v62  ;;  %1937 = vmatpush1.bf16.msra.mxu1 %v2987_v63  ;;  %v3046_v62 = vld [vmem:[#allocation4 + $0x2e4] ss:$16 sps:$4 sm:$0xff]   ;;  %v3049_v63 = vld [vmem:[#allocation4 + $0x2ec] ss:$16 sps:$4 sm:$0xff]  }
  0xed   :  { %1856 = vmatprep.subr.bf16.mxu0 %v2992_v0  ;;  %1938 = vmatprep.subr.bf16.mxu1 %v2995_v1  ;;  %v3044_v0 = vld [vmem:[#allocation4 + $0x2e0] ss:$16 sps:$4 sm:$0xff]   ;;  %v3047_v1 = vld [vmem:[#allocation4 + $0x2e8] ss:$16 sps:$4 sm:$0xff]  }
  0xf0   :  { %1857 = vmatpush1.bf16.msra.mxu0 %v2990_v2  ;;  %1939 = vmatpush1.bf16.msra.mxu1 %v2993_v3  ;;  %v3052_v2 = vld [vmem:[#allocation4 + $0x304] ss:$16 sps:$4 sm:$0xff]   ;;  %v3055_v3 = vld [vmem:[#allocation4 + $0x30c] ss:$16 sps:$4 sm:$0xff]  }
  0xf1   :  { %1858 = vmatprep.subr.bf16.mxu0 %v2998_v4  ;;  %1940 = vmatprep.subr.bf16.mxu1 %v3001_v5  ;;  %v3050_v4 = vld [vmem:[#allocation4 + $0x300] ss:$16 sps:$4 sm:$0xff]   ;;  %v3053_v5 = vld [vmem:[#allocation4 + $0x308] ss:$16 sps:$4 sm:$0xff]  }
  0xf4   :  { %1859 = vmatpush1.bf16.msra.mxu0 %v2996_v6  ;;  %1941 = vmatpush1.bf16.msra.mxu1 %v2999_v7  ;;  %v3058_v6 = vld [vmem:[#allocation4 + $0x324] ss:$16 sps:$4 sm:$0xff]   ;;  %v3061_v7 = vld [vmem:[#allocation4 + $0x32c] ss:$16 sps:$4 sm:$0xff]  }
  0xf5   :  { %1869 = vmatprep.subr.bf16.mxu0 %v3004_v8  ;;  %1951 = vmatprep.subr.bf16.mxu1 %v3007_v9  ;;  %v3056_v8 = vld [vmem:[#allocation4 + $0x320] ss:$16 sps:$4 sm:$0xff]   ;;  %v3059_v9 = vld [vmem:[#allocation4 + $0x328] ss:$16 sps:$4 sm:$0xff]  }
 0x18a   :  { %v941_v19 = vpop.f32.mrb[0].mxu0  ;;  %v3321_v20 = vpop.f32.mrb[0].mxu1 }
 0x18b   :  { %v2683_v21 = vadd.f32 %v941_v19, %v209_v16  ;;  %v943_v22 = vpop.f32.mrb[1].mxu0  ;;  %v1025_v23 = vpop.f32.mrb[1].mxu1  ;;  %v3067_v16 = vld [vmem:[#allocation4 + $0x34c] ss:$16 sps:$4 sm:$0xff]   ;;  %v3070_v19 = vld [vmem:[#allocation4 + $0x364] ss:$16 sps:$4 sm:$0xff]  }
 0x18c   :  { %v2684_v24 = vadd.f32 %v943_v22, %v213_v17  ;;  %v2686_v25 = vadd.f32 %v1025_v23, %v221_v18  ;;  %v945_v26 = vpop.f32.mrb[2].mxu0  ;;  %v1027_v27 = vpop.f32.mrb[2].mxu1  ;;  %v3062_v17 = vld [vmem:[#allocation4 + $0x340] ss:$16 sps:$4 sm:$0xff]   ;;  %v3065_v18 = vld [vmem:[#allocation4 + $0x348] ss:$16 sps:$4 sm:$0xff]  }
 0x18d   :  { %v1030_v28 = vmax.f32 %v2683_v21, 0.0  ;;  %v946_v29 = vpop.f32.mrb[3].mxu0  ;;  %v1028_v30 = vpop.f32.mrb[3].mxu1  ;;  %v3073_v21 = vld [vmem:[#allocation4 + $0x36c] ss:$16 sps:$4 sm:$0xff]  }
 0x18e   :  { %v1031_v31 = vmax.f32 %v2684_v24, 0.0  ;;  %v1033_v32 = vmax.f32 %v2686_v25, 0.0  ;;  %v3068_v22 = vld [vmem:[#allocation4 + $0x360] ss:$16 sps:$4 sm:$0xff]   ;;  %v3071_v23 = vld [vmem:[#allocation4 + $0x368] ss:$16 sps:$4 sm:$0xff]  }
 0x18f   :  { %v1034_v36 = vpack.c.bf16 %v1030_v28, %v1030_v28  ;;  %v3076_v24 = vld [vmem:[#allocation4 + $0x384] ss:$16 sps:$4 sm:$0xff]   ;;  %v3079_v25 = vld [vmem:[#allocation4 + $0x38c] ss:$16 sps:$4 sm:$0xff]   ;;  %v3074_v26 = vld [vmem:[#allocation4 + $0x380] ss:$16 sps:$4 sm:$0xff]  }
 0x190   :  { %v1035_v33 = vpack.c.bf16 %v1031_v31, %v1031_v31  ;;  %v1037_v39 = vpack.c.bf16 %v1033_v32, %v1033_v32  ;;  %v3077_v27 = vld [vmem:[#allocation4 + $0x388] ss:$16 sps:$4 sm:$0xff]   ;;  %v216_v28 = vsub.s32 2, %v3302_v11  ;;  %v3082_v29 = vld [vmem:[#allocation4 + $0x3a4] ss:$16 sps:$4 sm:$0xff]  }
 0x191   :  { %v3085_v30 = vld [vmem:[#allocation4 + $0x3ac] ss:$16 sps:$4 sm:$0xff]   ;;  %v3080_v31 = vld [vmem:[#allocation4 + $0x3a0] ss:$16 sps:$4 sm:$0xff]   ;;  %v3083_v32 = vld [vmem:[#allocation4 + $0x3a8] ss:$16 sps:$4 sm:$0xff]  }
 0x192   :  { %1860 = vmatprep.mubr.bf16.mxu0 %v1035_v33  ;;  %1942 = vmatprep.mubr.bf16.mxu1 %v1035_v33  ;;  %v217_v33 = vrot.slane %v3308_v13, %v216_v28  ;;  %v3098_v13 = vld [vmem:[#allocation6 + $0x40] sm:$0xff]  }
 0x193   :  { %1861 = vmatmul.mubr.bf16.vlgmr.msra.gmra.mrb[4].mxu0 %v1034_v36  ;;  %1943 = vmatmul.mubr.bf16.vlgmr.msra.gmra.mrb[4].mxu1 %v1034_v36  ;;  %v3086_v36 = vld [vmem:[#allocation4 + $0x3c0] ss:$16 sps:$4 sm:$0xff]  }
 0x194   :  { %1870 = vmatpush1.bf16.msra.mxu0 %v3002_v34  ;;  %1952 = vmatpush1.bf16.msra.mxu1 %v3005_v35  ;;  %v3088_v34 = vld [vmem:[#allocation4 + $0x3c4] ss:$16 sps:$4 sm:$0xff]   ;;  %v3091_v35 = vld [vmem:[#allocation4 + $0x3cc] ss:$16 sps:$4 sm:$0xff]  }
 0x195   :  { %1901 = vmatprep.mubr.bf16.mxu0 %v1037_v39  ;;  %1983 = vmatprep.mubr.bf16.mxu1 %v1037_v39  ;;  %v3094_v39 = vld [vmem:[#allocation4 + $0x3e4] ss:$16 sps:$4 sm:$0xff]  }
 0x196   :  { %1871 = vmatprep.subr.bf16.mxu0 %v3010_v37  ;;  %1953 = vmatprep.subr.bf16.mxu1 %v3013_v38  ;;  %v3089_v37 = vld [vmem:[#allocation4 + $0x3c8] ss:$16 sps:$4 sm:$0xff]   ;;  %v2685_v38 = vadd.f32 %v3321_v20, %v217_v33 }
 0x197   :  { %v3102_v20 = vld [vmem:[#allocation6 + $0x48] sm:$0xff]  }
 0x198   :  { %1872 = vmatpush1.bf16.msra.mxu0 %v3008_v40  ;;  %1954 = vmatpush1.bf16.msra.mxu1 %v3011_v41  ;;  %v3097_v40 = vld [vmem:[#allocation4 + $0x3ec] ss:$16 sps:$4 sm:$0xff]   ;;  %v3092_v41 = vld [vmem:[#allocation4 + $0x3e0] ss:$16 sps:$4 sm:$0xff]  }
 0x199   :  { %1873 = vmatprep.subr.bf16.mxu0 %v3016_v42  ;;  %1955 = vmatprep.subr.bf16.mxu1 %v3019_v43  ;;  %v3095_v42 = vld [vmem:[#allocation4 + $0x3e8] ss:$16 sps:$4 sm:$0xff]   ;;  %v1032_v43 = vmax.f32 %v2685_v38, 0.0 }
 0x19c   :  { %1874 = vmatpush1.bf16.msra.mxu0 %v3014_v44  ;;  %1956 = vmatpush1.bf16.msra.mxu1 %v3017_v45  ;;  %v3099_v44 = vld [vmem:[#allocation6 + $0xc0] sm:$0xff]  }
 0x19d   :  { %1875 = vmatprep.subr.bf16.mxu0 %v3022_v46  ;;  %1957 = vmatprep.subr.bf16.mxu1 %v3025_v47  ;;  %v3100_v45 = vld [vmem:[#allocation6] sm:$0xff]   ;;  %v1036_v47 = vpack.c.bf16 %v1032_v43, %v1032_v43 }
 0x19e   :  { %v3101_v46 = vld [vmem:[#allocation6 + $0x80] sm:$0xff]  }
 0x1a0   :  { %1876 = vmatpush1.bf16.msra.mxu0 %v3020_v48  ;;  %1958 = vmatpush1.bf16.msra.mxu1 %v3023_v49  ;;  %v3103_v48 = vld [vmem:[#allocation6 + $0xc8] sm:$0xff]  }
 0x1a1   :  { %1877 = vmatprep.subr.bf16.mxu0 %v3028_v50  ;;  %1959 = vmatprep.subr.bf16.mxu1 %v3031_v51  ;;  %v3104_v49 = vld [vmem:[#allocation6 + $0x8] sm:$0xff]   ;;  %v3106_v51 = vld [vmem:[#allocation6 + $0x50] sm:$0xff]  }
 0x1a2   :  { %v3105_v50 = vld [vmem:[#allocation6 + $0x88] sm:$0xff]  }
 0x1a4   :  { %1878 = vmatpush1.bf16.msra.mxu0 %v3026_v52  ;;  %1960 = vmatpush1.bf16.msra.mxu1 %v3029_v53  ;;  %v3107_v52 = vld [vmem:[#allocation6 + $0xd0] sm:$0xff]  }
 0x1a5   :  { %1879 = vmatprep.subr.bf16.mxu0 %v3034_v54  ;;  %1961 = vmatprep.subr.bf16.mxu1 %v3037_v55  ;;  %v3108_v53 = vld [vmem:[#allocation6 + $0x10] sm:$0xff]   ;;  %v3110_v55 = vld [vmem:[#allocation6 + $0x58] sm:$0xff]  }
 0x1a6   :  { %v3109_v54 = vld [vmem:[#allocation6 + $0x90] sm:$0xff]  }
 0x1a8   :  { %1880 = vmatpush1.bf16.msra.mxu0 %v3032_v56  ;;  %1962 = vmatpush1.bf16.msra.mxu1 %v3035_v57  ;;  %v3111_v56 = vld [vmem:[#allocation6 + $0xd8] sm:$0xff]  }
 0x1a9   :  { %1881 = vmatprep.subr.bf16.mxu0 %v3040_v58  ;;  %1963 = vmatprep.subr.bf16.mxu1 %v3043_v59  ;;  %v3112_v57 = vld [vmem:[#allocation6 + $0x18] sm:$0xff]   ;;  %v3114_v59 = vld [vmem:[#allocation6 + $0x60] sm:$0xff]  }
 0x1aa   :  { %v3113_v58 = vld [vmem:[#allocation6 + $0x98] sm:$0xff]  }
 0x1ac   :  { %1882 = vmatpush1.bf16.msra.mxu0 %v3038_v60  ;;  %1964 = vmatpush1.bf16.msra.mxu1 %v3041_v61  ;;  %v3115_v60 = vld [vmem:[#allocation6 + $0xe0] sm:$0xff]  }
 0x1ad   :  { %1883 = vmatprep.subr.bf16.mxu0 %v3046_v62  ;;  %1965 = vmatprep.subr.bf16.mxu1 %v3049_v63  ;;  %v3116_v61 = vld [vmem:[#allocation6 + $0x20] sm:$0xff]   ;;  %v3118_v63 = vld [vmem:[#allocation6 + $0x68] sm:$0xff]  }
 0x1ae   :  { %v3117_v62 = vld [vmem:[#allocation6 + $0xa0] sm:$0xff]  }
 0x1b0   :  { %1884 = vmatpush1.bf16.msra.mxu0 %v3044_v0  ;;  %1966 = vmatpush1.bf16.msra.mxu1 %v3047_v1  ;;  %v3119_v0 = vld [vmem:[#allocation6 + $0xe8] sm:$0xff]  }
 0x1b1   :  { %1885 = vmatprep.subr.bf16.mxu0 %v3052_v2  ;;  %1967 = vmatprep.subr.bf16.mxu1 %v3055_v3  ;;  %v3120_v1 = vld [vmem:[#allocation6 + $0x28] sm:$0xff]   ;;  %v3122_v3 = vld [vmem:[#allocation6 + $0x70] sm:$0xff]  }
 0x1b2   :  { %v3121_v2 = vld [vmem:[#allocation6 + $0xa8] sm:$0xff]  }
 0x1b4   :  { %1886 = vmatpush1.bf16.msra.mxu0 %v3050_v4  ;;  %1968 = vmatpush1.bf16.msra.mxu1 %v3053_v5  ;;  %v3123_v4 = vld [vmem:[#allocation6 + $0xf0] sm:$0xff]  }
 0x1b5   :  { %1887 = vmatprep.subr.bf16.mxu0 %v3058_v6  ;;  %1969 = vmatprep.subr.bf16.mxu1 %v3061_v7  ;;  %v3124_v5 = vld [vmem:[#allocation6 + $0x30] sm:$0xff]   ;;  %v3126_v7 = vld [vmem:[#allocation6 + $0x78] sm:$0xff]  }
 0x1b6   :  { %v3125_v6 = vld [vmem:[#allocation6 + $0xb0] sm:$0xff]  }
 0x1b8   :  { %1888 = vmatpush1.bf16.msra.mxu0 %v3056_v8  ;;  %1970 = vmatpush1.bf16.msra.mxu1 %v3059_v9  ;;  %v3127_v8 = vld [vmem:[#allocation6 + $0xf8] sm:$0xff]  }
 0x1b9   :  { %1889 = vmatprep.subr.bf16.mxu0 %v3064_v10  ;;  %1971 = vmatprep.subr.bf16.mxu1 %v3067_v16  ;;  %v3128_v9 = vld [vmem:[#allocation6 + $0x38] sm:$0xff]   ;;  %v1166_v16 = vld [vmem:[%s3349_s4] sm:$0xf] }
 0x1ba   :  { %v3129_v10 = vld [vmem:[#allocation6 + $0xb8] sm:$0xff]  }
 0x1bc   :  { %1890 = vmatpush1.bf16.msra.mxu0 %v3062_v17  ;;  %1972 = vmatpush1.bf16.msra.mxu1 %v3065_v18  ;;  %v1171_v17 = vrot.slane %v1166_v16, %v208_v12  ;;  %v1179_v18 = vrot.slane %v1166_v16, %v216_v28 }
 0x1bd   :  { %1891 = vmatprep.subr.bf16.mxu0 %v3070_v19  ;;  %1973 = vmatprep.subr.bf16.mxu1 %v3073_v21  ;;  %v1175_v19 = vrot.slane %v1166_v16, %v212_v14  ;;  %v1183_v21 = vrot.slane %v1166_v16, %v220_v15 }
 0x1c0   :  { %1892 = vmatpush1.bf16.msra.mxu0 %v3068_v22  ;;  %1974 = vmatpush1.bf16.msra.mxu1 %v3071_v23 }
 0x1c1   :  { %1893 = vmatprep.subr.bf16.mxu0 %v3076_v24  ;;  %1975 = vmatprep.subr.bf16.mxu1 %v3079_v25 }
 0x1c4   :  { %1894 = vmatpush1.bf16.msra.mxu0 %v3074_v26  ;;  %1976 = vmatpush1.bf16.msra.mxu1 %v3077_v27 }
 0x1c5   :  { %1895 = vmatprep.subr.bf16.mxu0 %v3082_v29  ;;  %1977 = vmatprep.subr.bf16.mxu1 %v3085_v30 }
 0x1c8   :  { %1896 = vmatpush1.bf16.msra.mxu0 %v3080_v31  ;;  %1978 = vmatpush1.bf16.msra.mxu1 %v3083_v32 }
 0x1c9   :  { %1897 = vmatprep.subr.bf16.mxu0 %v3088_v34  ;;  %1979 = vmatprep.subr.bf16.mxu1 %v3091_v35 }
 0x1cc   :  { %1898 = vmatpush1.bf16.msra.mxu0 %v3086_v36  ;;  %1980 = vmatpush1.bf16.msra.mxu1 %v3089_v37 }
 0x1cd   :  { %1899 = vmatprep.subr.bf16.mxu0 %v3094_v39  ;;  %1981 = vmatprep.subr.bf16.mxu1 %v3097_v40  ;;  %v2606_v40 = vld [vmem:[%s3351_s6] ss:$0 sm:$0xff] }
 0x1d0   :  { %1900 = vmatpush1.bf16.msra.mxu0 %v3092_v41  ;;  %1982 = vmatpush1.bf16.msra.mxu1 %v3095_v42 }
 0x1d1   :  { %2639 = vmatprep.subr.bf16.mxu0 %v3098_v13  ;;  %2661 = vmatprep.subr.bf16.mxu1 %v3099_v44 }
 0x1d3   :  { %1902 = vmatmul.mubr.bf16.vlgmr.msra.gmra.mrb[4].mxu0 %v1036_v47  ;;  %1984 = vmatmul.mubr.bf16.vlgmr.msra.gmra.mrb[4].mxu1 %v1036_v47 }
 0x1d4   :  { %2640 = vmatpush3.bf16.msra.mxu0 %v3100_v45  ;;  %2662 = vmatpush3.bf16.msra.mxu1 %v3101_v46 }
 0x1d5   :  { %2641 = vmatprep.subr.bf16.mxu0 %v3102_v20  ;;  %2663 = vmatprep.subr.bf16.mxu1 %v3103_v48 }
 0x1d8   :  { %2642 = vmatpush3.bf16.msra.mxu0 %v3104_v49  ;;  %2664 = vmatpush3.bf16.msra.mxu1 %v3105_v50 }
 0x1d9   :  { %2643 = vmatprep.subr.bf16.mxu0 %v3106_v51  ;;  %2665 = vmatprep.subr.bf16.mxu1 %v3107_v52 }
 0x1dc   :  { %2644 = vmatpush3.bf16.msra.mxu0 %v3108_v53  ;;  %2666 = vmatpush3.bf16.msra.mxu1 %v3109_v54 }
 0x1dd   :  { %2645 = vmatprep.subr.bf16.mxu0 %v3110_v55  ;;  %2667 = vmatprep.subr.bf16.mxu1 %v3111_v56 }
 0x1e0   :  { %2646 = vmatpush3.bf16.msra.mxu0 %v3112_v57  ;;  %2668 = vmatpush3.bf16.msra.mxu1 %v3113_v58 }
 0x1e1   :  { %2647 = vmatprep.subr.bf16.mxu0 %v3114_v59  ;;  %2669 = vmatprep.subr.bf16.mxu1 %v3115_v60 }
 0x1e4   :  { %2648 = vmatpush3.bf16.msra.mxu0 %v3116_v61  ;;  %2670 = vmatpush3.bf16.msra.mxu1 %v3117_v62 }
 0x1e5   :  { %2649 = vmatprep.subr.bf16.mxu0 %v3118_v63  ;;  %2671 = vmatprep.subr.bf16.mxu1 %v3119_v0 }
 0x1e8   :  { %2650 = vmatpush3.bf16.msra.mxu0 %v3120_v1  ;;  %2672 = vmatpush3.bf16.msra.mxu1 %v3121_v2 }
 0x1e9   :  { %2651 = vmatprep.subr.bf16.mxu0 %v3122_v3  ;;  %2673 = vmatprep.subr.bf16.mxu1 %v3123_v4 }
 0x1ec   :  { %2652 = vmatpush3.bf16.msra.mxu0 %v3124_v5  ;;  %2674 = vmatpush3.bf16.msra.mxu1 %v3125_v6 }
 0x1ed   :  { %2653 = vmatprep.subr.bf16.mxu0 %v3126_v7  ;;  %2675 = vmatprep.subr.bf16.mxu1 %v3127_v8 }
 0x1f0   :  { %2654 = vmatpush3.bf16.msra.mxu0 %v3128_v9  ;;  %2676 = vmatpush3.bf16.msra.mxu1 %v3129_v10 }
 0x2a6   :  { %v1903_v22 = vpop.f32.mrb[4].mxu0  ;;  %v1985_v23 = vpop.f32.mrb[4].mxu1 }
 0x2a7   :  { %v2687_v24 = vadd.f32 %v1903_v22, %v1171_v17  ;;  %v2689_v25 = vadd.f32 %v1985_v23, %v1179_v18  ;;  %v1905_v26 = vpop.f32.mrb[5].mxu0  ;;  %v1987_v27 = vpop.f32.mrb[5].mxu1 }
 0x2a8   :  { %v2688_v29 = vadd.f32 %v1905_v26, %v1175_v19  ;;  %v2690_v30 = vadd.f32 %v1987_v27, %v1183_v21  ;;  %v1907_v31 = vpop.f32.mrb[6].mxu0  ;;  %v1989_v32 = vpop.f32.mrb[6].mxu1 }
 0x2a9   :  { %v1992_v12 = vmax.f32 %v2687_v24, 0.0  ;;  %v1994_v33 = vmax.f32 %v2689_v25, 0.0  ;;  %v1908_v34 = vpop.f32.mrb[7].mxu0  ;;  %v1990_v28 = vpop.f32.mrb[7].mxu1 }
 0x2aa   :  { %v1993_v35 = vmax.f32 %v2688_v29, 0.0  ;;  %v1995_v36 = vmax.f32 %v2690_v30, 0.0 }
 0x2ab   :  { %v1996_v11 = vpack.c.bf16 %v1992_v12, %v1992_v12  ;;  %v1998_v15 = vpack.c.bf16 %v1994_v33, %v1994_v33 }
 0x2ac   :  { %v1997_v14 = vpack.c.bf16 %v1993_v35, %v1993_v35  ;;  %v1999_v37 = vpack.c.bf16 %v1995_v36, %v1995_v36 }
 0x2ae   :  { %2295 = vmatprep.mubr.bf16.mxu0 %v1997_v14  ;;  %2335 = vmatprep.mubr.bf16.mxu1 %v1999_v37 }
 0x2af   :  { %2296 = vmatmul.mubr.bf16.vlgmr.msra.gmra.mrb[8].mxu0 %v1996_v11  ;;  %2336 = vmatmul.mubr.bf16.vlgmr.msra.gmra.mrb[8].mxu1 %v1998_v15 }
 0x382   :  { %v2655_v38 = vpop.f32.mrb[8].mxu0  ;;  %v2677_v39 = vpop.f32.mrb[8].mxu1 }
 0x383   :  { %v2656_v41 = vpop.f32.mrb[9].mxu0  ;;  %v2678_v42 = vpop.f32.mrb[9].mxu1 }
 0x384   :  { %v2657_v43 = vadd.f32 %v2656_v41, %v2655_v38  ;;  %v2679_v13 = vadd.f32 %v2678_v42, %v2677_v39  ;;  %v2658_v44 = vpop.f32.mrb[10].mxu0  ;;  %v2680_v45 = vpop.f32.mrb[10].mxu1 }
 0x385   :  { %v2659_v46 = vpop.f32.mrb[11].mxu0  ;;  %v2681_v47 = vpop.f32.mrb[11].mxu1 }
 0x386   :  { %v2298_v20 = vadd.f32 %v2657_v43, %v2606_v40 }
 0x388   :  { %v2338_v48 = vadd.f32 %v2679_v13, %v2298_v20 }
 0x38a   :  { %2343 = vst [vmem:[%s3352_s7] sm:$0xff] %v2338_v48 }
 0x38b   :  { %2348 = vsyncpa [#allocation3], 1 }
 0x38c   :  { %2349 = vsyncpa [#allocation5], 1 }

</bundles_post_ra>
